<compile_context>
chip_gen: v7x
topology: tpu7x:2x2x1
jax: 0.10.0
libtpu: 0.0.40
codegen_flags: <defaults>
</compile_context>

<pallas_src>
import functools

import jax
import jax.numpy as jnp
from jax import lax
from jax.experimental import pallas as pl
from jax.experimental.pallas import tpu as pltpu


def _up_conv_kernel(xw_ref, w_ref, shift_ref, o_ref):
    """One (batch, row-tile) block of Upsample(2x nearest)+Conv3x3+BN(eval)+ReLU.

    xw_ref:    (1, 1, TH+2, Wp, Kpad)  bf16; Kpad >= 3*Cin width-tap im2col pack,
                                       overlapping halo row tile (2 extra rows).
    w_ref:     (4, Kpad, 2*Cpad)       bf16; indexed by (py, a); both px phases are
                                       concatenated along the output dim, BN scale folded.
    shift_ref: (1, 2*Cpad)             f32;  folded conv-bias + BN shift (both px halves).
    o_ref:     (1, TH, 2, Wp, 2*Cpad)  bf16; [0, r, py, c, px*Cpad + ch].
    """
    TH = o_ref.shape[1]
    Wp = o_ref.shape[3]
    Kp = xw_ref.shape[4]
    C2 = o_ref.shape[4]

    shift = shift_ref[...]                      # (1, C2), broadcasts over rows

    # Three row-shifted views of the packed halo tile (static leading-dim slices:
    # no sublane relayout), flattened to (TH*Wp, Kp) for the MXU.  The reshape is a
    # free view because Wp is a multiple of 8.
    def rows(off):
        return xw_ref[0, 0, pl.ds(off, TH), :, :].reshape(TH * Wp, Kp)

    xs = (rows(0), rows(1), rows(2))

    # 2 row phases; each = 2 matmuls (row taps a = 0, 1) with N = 2*Cpad (both px
    # phases fused), followed by ONE contiguous lane-dense store per phase.
    for py in range(2):
        acc = jnp.dot(xs[py], w_ref[2 * py],
                      preferred_element_type=jnp.float32)
        acc = acc + jnp.dot(xs[py + 1], w_ref[2 * py + 1],
                            preferred_element_type=jnp.float32)
        y = jnp.maximum(acc + shift, 0.0)       # fused bias/BN shift + ReLU
        o_ref[0, :, py, :, :] = y.reshape(TH, Wp, C2).astype(o_ref.dtype)


def up_conv_forward(x_nchw, w, b, gamma, beta, run_mean, run_var,
                    eps=1e-5, row_tile=None):
    """x_nchw: (N, Cin, H, W); w: (Cout, Cin, 3, 3) OIHW.  Returns (N, Cout, 2H, 2W) f32."""
    N, Cin, H, W = x_nchw.shape
    Cout = w.shape[0]
    K = 3 * Cin

    # Output lane density only needs the stored last dim (2*Cpad) to be a 128-multiple.
    Cpad = ((Cout + 63) // 64) * 64
    C2 = 2 * Cpad
    # Sublane-aligned width so the in-kernel (TH, Wp, .) <-> (TH*Wp, .) reshapes are views.
    Wp = ((W + 7) // 8) * 8
    # Contraction dim: pad to 128 only when the overhead is small (near-128 ragged K),
    # otherwise just to a sublane multiple (padding small K to 128 would inflate the
    # packed-input HBM traffic of a mem-bound kernel).
    K128 = ((K + 127) // 128) * 128
    Kpad = K128 if (K128 - K) * 8 <= K else ((K + 7) // 8) * 8

    # ---- activations: NCHW -> NHWC (bf16), zero pad, width-tap im2col pack -------------
    x_nhwc = jnp.transpose(x_nchw, (0, 2, 3, 1)).astype(jnp.bfloat16)      # (N,H,W,Cin)
    x_pad = jnp.pad(x_nhwc, ((0, 0), (1, 1), (1, 1 + (Wp - W)), (0, 0)))   # (N,H+2,Wp+2,Cin)
    xw = jnp.concatenate([x_pad[:, :, t:t + Wp, :] for t in range(3)],
                         axis=-1)                                          # (N,H+2,Wp,K)
    if Kpad > K:
        xw = jnp.pad(xw, ((0, 0), (0, 0), (0, 0), (0, Kpad - K)))

    # ---- weights: sub-pixel decomposition, BN folded, px phases fused along Cout -------
    # NOTE: for extreme BN scales (tiny running_var) the scale could instead be kept as a
    # separate f32 epilogue multiply to decouple it from bf16 weight quantization.
    scale = gamma / jnp.sqrt(run_var + eps)                                # (Cout,)
    shift = beta + scale * (b - run_mean)                                  # (Cout,)
    w_s = w.astype(jnp.float32) * scale[:, None, None, None]               # (Cout,Cin,3,3)
    # row-tap / col-tap summation matrices of the nearest-2x phase decomposition
    Rh = jnp.array([[[1, 0, 0], [0, 1, 1]],
                    [[1, 1, 0], [0, 0, 1]]], jnp.float32)                  # (py, a, kh)
    Cw = jnp.array([[[1, 0, 0], [0, 1, 1], [0, 0, 0]],
                    [[0, 0, 0], [1, 1, 0], [0, 0, 1]]], jnp.float32)       # (px, b, kw)
    ww = jnp.einsum('pak,qbl,oikl->pabiqo', Rh, Cw, w_s)                   # (2,2,3,Cin,2,Cout)
    ww = jnp.pad(ww, ((0, 0),) * 5 + ((0, Cpad - Cout),))                  # pad Cout -> Cpad
    ww = ww.reshape(4, K, C2)                                              # (py*2+a, b*Cin+ci, px*Cpad+co)
    if Kpad > K:
        ww = jnp.pad(ww, ((0, 0), (0, Kpad - K), (0, 0)))
    ww = ww.astype(jnp.bfloat16)
    shift_p = jnp.pad(shift.astype(jnp.float32), (0, Cpad - Cout))         # (Cpad,)
    shift_p = jnp.tile(shift_p, 2).reshape(1, C2)                          # (1, 2*Cpad)

    # ---- per-generation VMEM budget, row tile, declared vmem limit ----------------------
    try:
        phys_vmem = int(pltpu.get_tpu_info().vmem_capacity_bytes)
    except Exception:                      # conservative fallback: v7x-sized VMEM
        phys_vmem = 64 * 1024 * 1024
    vmem_limit = min(100 * 1024 * 1024, (phys_vmem * 3) // 4)

    def vmem_est(th):                      # double-buffered tiles + weights + shift
        inp = 2 * (th + 2) * Wp * Kpad * 2
        out = 2 * th * 2 * Wp * C2 * 2
        wts = 2 * (4 * Kpad * C2 * 2 + 8 * C2 * 4)
        return inp + out + wts

    if row_tile is None:
        budget = (vmem_limit * 4) // 5     # leave headroom for pipeline internals
        row_tile = 1
        for th in range(1, H + 1):
            if H % th == 0 and vmem_est(th) <= budget:
                row_tile = th
    # TODO(synk): no remainder-tile path; H must be divisible by the chosen row tile.
    assert H % row_tile == 0, (H, row_tile)
    TH = row_tile
    nT = H // TH
    vmem_limit = min(phys_vmem, max(vmem_limit, vmem_est(TH) + (8 << 20)))

    # ---- pre-chunk the packed image into overlapping (TH+2)-row halo tiles --------------
    # Per-grid-step input VMEM now scales with TH instead of H (fits v7x's 64 MiB), and
    # the per-tile input DMA pipelines against compute.
    # TODO(synk): a manual strided-DMA pack (memory_space=pl.ANY + make_async_copy) could
    #             build this layout during the copy and drop this wrapper HBM pass.
    xw_t = jnp.stack([xw[:, i * TH:i * TH + TH + 2] for i in range(nT)],
                     axis=1)                                               # (N,nT,TH+2,Wp,Kpad)

    flops = 2 * 4 * TH * Wp * Kpad * C2 * nT * N
    bytes_accessed = (xw_t.size * 2 + N * H * 2 * Wp * C2 * 2
                      + ww.size * 2 + shift_p.size * 4)

    out = pl.pallas_call(
        _up_conv_kernel,
        out_shape=jax.ShapeDtypeStruct((N, H, 2, Wp, C2), jnp.bfloat16),
        grid_spec=pltpu.PrefetchScalarGridSpec(
            num_scalar_prefetch=0,
            grid=(N, nT),
            in_specs=[
                pl.BlockSpec((1, 1, TH + 2, Wp, Kpad),
                             lambda n, i: (n, i, 0, 0, 0)),
                pl.BlockSpec((4, Kpad, C2), lambda n, i: (0, 0, 0)),
                pl.BlockSpec((1, C2), lambda n, i: (0, 0)),
            ],
            out_specs=pl.BlockSpec((1, TH, 2, Wp, C2),
                                   lambda n, i: (n, i, 0, 0, 0)),
        ),
        compiler_params=pltpu.CompilerParams(
            dimension_semantics=("parallel", "parallel"),
            vmem_limit_bytes=int(vmem_limit)),
        cost_estimate=pl.CostEstimate(flops=int(flops), transcendentals=0,
                                      bytes_accessed=int(bytes_accessed)),
    )(xw_t, ww, shift_p)

    # free adjacent-dim reshapes, all in bf16: (N,H,2,Wp,2,Cpad) -> (N,2H,2Wp,Cpad);
    # crop channel/width padding, NCHW + f32 cast only at the PyTorch API boundary.
    out = out.reshape(N, H, 2, Wp, 2, Cpad).reshape(N, 2 * H, 2 * Wp, Cpad)
    out = out[:, :, :2 * W, :Cout]
    return jnp.transpose(out, (0, 3, 1, 2)).astype(jnp.float32)            # (N,Cout,2H,2W)


def _reference(x_nchw, w, b, gamma, beta, run_mean, run_var, eps=1e-5):
    x_up = jnp.repeat(jnp.repeat(x_nchw, 2, axis=2), 2, axis=3).astype(jnp.float32)
    y = lax.conv_general_dilated(
        x_up, w.astype(jnp.float32), window_strides=(1, 1), padding=((1, 1), (1, 1)),
        dimension_numbers=("NCHW", "OIHW", "NCHW"))
    y = y + b.reshape(1, -1, 1, 1)
    y = (y - run_mean.reshape(1, -1, 1, 1)) / jnp.sqrt(run_var.reshape(1, -1, 1, 1) + eps)
    y = y * gamma.reshape(1, -1, 1, 1) + beta.reshape(1, -1, 1, 1)
    return jnp.maximum(y, 0.0)


if __name__ == "__main__":
    key = jax.random.PRNGKey(0)
    k_x, k_w, k_b, k_g, k_beta, k_m, k_v = jax.random.split(key, 7)

    N, Cin, H, W = 2, 4, 16, 16
    Cout = 8

    x = jax.random.normal(k_x, (N, Cin, H, W), jnp.float32)
    w = jax.random.normal(k_w, (Cout, Cin, 3, 3), jnp.float32) * 0.1
    b = jax.random.normal(k_b, (Cout,), jnp.float32) * 0.1
    gamma = jax.random.uniform(k_g, (Cout,), jnp.float32, 0.5, 1.5)
    beta = jax.random.normal(k_beta, (Cout,), jnp.float32) * 0.1
    run_mean = jax.random.normal(k_m, (Cout,), jnp.float32) * 0.1
    run_var = jax.random.uniform(k_v, (Cout,), jnp.float32, 0.5, 1.5)

    ref = _reference(x, w, b, gamma, beta, run_mean, run_var)

    def check(out):
        assert out.shape == (N, Cout, 2 * H, 2 * W), out.shape
        err_max = float(jnp.max(jnp.abs(out - ref)))
        err_mean = float(jnp.mean(jnp.abs(out - ref)))
        # Inputs/weights/output are carried in bf16 (f32 MXU accumulation), so the
        # tolerance is set by bf16 quantization, not by the kernel structure.
        assert err_max < 1e-1, (err_max, err_mean)
        assert err_mean < 1e-2, (err_max, err_mean)

    # explicit row tile: exercises the multi-tile (batch, row-tile) grid + halo chunking
    fwd = jax.jit(functools.partial(up_conv_forward, row_tile=8))
    check(jax.block_until_ready(fwd(x, w, b, gamma, beta, run_mean, run_var)))

    # auto row tile: exercises the per-generation VMEM budget heuristic
    fwd_auto = jax.jit(up_conv_forward)
    check(jax.block_until_ready(fwd_auto(x, w, b, gamma, beta, run_mean, run_var)))

    print("KERNEL_OK")
</pallas_src>

<mosaic_0001>
module attributes {stable_mosaic.version = 11 : i64} {
  func.func @_up_conv_kernel(%arg0: i32, %arg1: i32, %arg2: memref<1x1x10x16x16xbf16, #tpu.memory_space<vmem>>, %arg3: memref<4x16x128xbf16, #tpu.memory_space<vmem>>, %arg4: memref<1x128xf32, #tpu.memory_space<vmem>>, %arg5: memref<1x8x2x16x128xbf16, #tpu.memory_space<vmem>>) attributes {dimension_semantics = [#tpu.dimension_semantics<parallel>, #tpu.dimension_semantics<parallel>], iteration_bounds = array<i64: 2, 2>, scalar_prefetch = 0 : i64, scratch_operands = 0 : i64, tpu.core_type = #tpu.core_type<tc>, window_params = [{transform_indices = @transform_0, window_bounds = array<i64: 1, 1, 10, 16, 16>}, {pipeline_mode = #tpu.pipeline_mode<synchronous>, transform_indices = @transform_1, window_bounds = array<i64: 4, 16, 128>}, {pipeline_mode = #tpu.pipeline_mode<synchronous>, transform_indices = @transform_2, window_bounds = array<i64: 1, 128>}, {transform_indices = @transform_3, window_bounds = array<i64: 1, 8, 2, 16, 128>}]} {
    %c0 = arith.constant 0 : index
    %c0_0 = arith.constant 0 : index
    %0 = vector.load %arg4[%c0, %c0_0] : memref<1x128xf32, #tpu.memory_space<vmem>>, vector<1x128xf32>
    %c0_1 = arith.constant 0 : index
    %c0_2 = arith.constant 0 : index
    %c0_3 = arith.constant 0 : index
    %c0_4 = arith.constant 0 : index
    %c0_5 = arith.constant 0 : index
    %1 = vector.load %arg2[%c0_1, %c0_2, %c0_3, %c0_4, %c0_5] : memref<1x1x10x16x16xbf16, #tpu.memory_space<vmem>>, vector<1x1x8x16x16xbf16>
    %2 = vector.shape_cast %1 : vector<1x1x8x16x16xbf16> to vector<8x16x16xbf16>
    %3 = vector.shape_cast %2 : vector<8x16x16xbf16> to vector<128x16xbf16>
    %c0_6 = arith.constant 0 : index
    %c0_7 = arith.constant 0 : index
    %c1 = arith.constant 1 : index
    %c0_8 = arith.constant 0 : index
    %c0_9 = arith.constant 0 : index
    %4 = vector.load %arg2[%c0_6, %c0_7, %c1, %c0_8, %c0_9] : memref<1x1x10x16x16xbf16, #tpu.memory_space<vmem>>, vector<1x1x8x16x16xbf16>
    %5 = vector.shape_cast %4 : vector<1x1x8x16x16xbf16> to vector<8x16x16xbf16>
    %6 = vector.shape_cast %5 : vector<8x16x16xbf16> to vector<128x16xbf16>
    %c0_10 = arith.constant 0 : index
    %c0_11 = arith.constant 0 : index
    %c2 = arith.constant 2 : index
    %c0_12 = arith.constant 0 : index
    %c0_13 = arith.constant 0 : index
    %7 = vector.load %arg2[%c0_10, %c0_11, %c2, %c0_12, %c0_13] : memref<1x1x10x16x16xbf16, #tpu.memory_space<vmem>>, vector<1x1x8x16x16xbf16>
    %8 = vector.shape_cast %7 : vector<1x1x8x16x16xbf16> to vector<8x16x16xbf16>
    %9 = vector.shape_cast %8 : vector<8x16x16xbf16> to vector<128x16xbf16>
    %c0_14 = arith.constant 0 : index
    %c0_15 = arith.constant 0 : index
    %c0_16 = arith.constant 0 : index
    %10 = vector.load %arg3[%c0_14, %c0_15, %c0_16] : memref<4x16x128xbf16, #tpu.memory_space<vmem>>, vector<1x16x128xbf16>
    %11 = vector.shape_cast %10 : vector<1x16x128xbf16> to vector<16x128xbf16>
    %cst = arith.constant dense<0.000000e+00> : vector<128x128xf32>
    %12 = tpu.matmul %3, %11, %cst {dimension_numbers = #tpu.dot_dimension_numbers<[1], [0], [0], [1], [0, 0, 1, 1], [], []>} : vector<128x16xbf16>, vector<16x128xbf16>, vector<128x128xf32> -> vector<128x128xf32>
    %c1_17 = arith.constant 1 : index
    %c0_18 = arith.constant 0 : index
    %c0_19 = arith.constant 0 : index
    %13 = vector.load %arg3[%c1_17, %c0_18, %c0_19] : memref<4x16x128xbf16, #tpu.memory_space<vmem>>, vector<1x16x128xbf16>
    %14 = vector.shape_cast %13 : vector<1x16x128xbf16> to vector<16x128xbf16>
    %cst_20 = arith.constant dense<0.000000e+00> : vector<128x128xf32>
    %15 = tpu.matmul %6, %14, %cst_20 {dimension_numbers = #tpu.dot_dimension_numbers<[1], [0], [0], [1], [0, 0, 1, 1], [], []>} : vector<128x16xbf16>, vector<16x128xbf16>, vector<128x128xf32> -> vector<128x128xf32>
    %16 = arith.addf %12, %15 : vector<128x128xf32>
    %17 = vector.broadcast %0 : vector<1x128xf32> to vector<128x128xf32>
    %18 = arith.addf %16, %17 : vector<128x128xf32>
    %cst_21 = arith.constant 0.000000e+00 : f32
    %19 = vector.broadcast %cst_21 : f32 to vector<128x128xf32>
    %20 = arith.maximumf %18, %19 : vector<128x128xf32>
    %21 = vector.shape_cast %20 : vector<128x128xf32> to vector<8x16x128xf32>
    %22 = arith.truncf %21 : vector<8x16x128xf32> to vector<8x16x128xbf16>
    %c0_22 = arith.constant 0 : index
    %c0_23 = arith.constant 0 : index
    %c0_24 = arith.constant 0 : index
    %c0_25 = arith.constant 0 : index
    %c0_26 = arith.constant 0 : index
    %23 = vector.load %arg5[%c0_22, %c0_23, %c0_24, %c0_25, %c0_26] : memref<1x8x2x16x128xbf16, #tpu.memory_space<vmem>>, vector<1x8x1x16x128xbf16>
    %24 = vector.shape_cast %23 : vector<1x8x1x16x128xbf16> to vector<8x16x128xbf16>
    %25 = vector.shape_cast %22 : vector<8x16x128xbf16> to vector<1x8x1x16x128xbf16>
    tpu.vector_store %arg5[%c0_22, %c0_23, %c0_24, %c0_25, %c0_26], %25 {strides = array<i32>} : memref<1x8x2x16x128xbf16, #tpu.memory_space<vmem>>, vector<1x8x1x16x128xbf16>,
    %c2_27 = arith.constant 2 : index
    %c0_28 = arith.constant 0 : index
    %c0_29 = arith.constant 0 : index
    %26 = vector.load %arg3[%c2_27, %c0_28, %c0_29] : memref<4x16x128xbf16, #tpu.memory_space<vmem>>, vector<1x16x128xbf16>
    %27 = vector.shape_cast %26 : vector<1x16x128xbf16> to vector<16x128xbf16>
    %cst_30 = arith.constant dense<0.000000e+00> : vector<128x128xf32>
    %28 = tpu.matmul %6, %27, %cst_30 {dimension_numbers = #tpu.dot_dimension_numbers<[1], [0], [0], [1], [0, 0, 1, 1], [], []>} : vector<128x16xbf16>, vector<16x128xbf16>, vector<128x128xf32> -> vector<128x128xf32>
    %c3 = arith.constant 3 : index
    %c0_31 = arith.constant 0 : index
    %c0_32 = arith.constant 0 : index
    %29 = vector.load %arg3[%c3, %c0_31, %c0_32] : memref<4x16x128xbf16, #tpu.memory_space<vmem>>, vector<1x16x128xbf16>
    %30 = vector.shape_cast %29 : vector<1x16x128xbf16> to vector<16x128xbf16>
    %cst_33 = arith.constant dense<0.000000e+00> : vector<128x128xf32>
    %31 = tpu.matmul %9, %30, %cst_33 {dimension_numbers = #tpu.dot_dimension_numbers<[1], [0], [0], [1], [0, 0, 1, 1], [], []>} : vector<128x16xbf16>, vector<16x128xbf16>, vector<128x128xf32> -> vector<128x128xf32>
    %32 = arith.addf %28, %31 : vector<128x128xf32>
    %33 = vector.broadcast %0 : vector<1x128xf32> to vector<128x128xf32>
    %34 = arith.addf %32, %33 : vector<128x128xf32>
    %cst_34 = arith.constant 0.000000e+00 : f32
    %35 = vector.broadcast %cst_34 : f32 to vector<128x128xf32>
    %36 = arith.maximumf %34, %35 : vector<128x128xf32>
    %37 = vector.shape_cast %36 : vector<128x128xf32> to vector<8x16x128xf32>
    %38 = arith.truncf %37 : vector<8x16x128xf32> to vector<8x16x128xbf16>
    %c0_35 = arith.constant 0 : index
    %c0_36 = arith.constant 0 : index
    %c1_37 = arith.constant 1 : index
    %c0_38 = arith.constant 0 : index
    %c0_39 = arith.constant 0 : index
    %39 = vector.load %arg5[%c0_35, %c0_36, %c1_37, %c0_38, %c0_39] : memref<1x8x2x16x128xbf16, #tpu.memory_space<vmem>>, vector<1x8x1x16x128xbf16>
    %40 = vector.shape_cast %39 : vector<1x8x1x16x128xbf16> to vector<8x16x128xbf16>
    %41 = vector.shape_cast %38 : vector<8x16x128xbf16> to vector<1x8x1x16x128xbf16>
    tpu.vector_store %arg5[%c0_35, %c0_36, %c1_37, %c0_38, %c0_39], %41 {strides = array<i32>} : memref<1x8x2x16x128xbf16, #tpu.memory_space<vmem>>, vector<1x8x1x16x128xbf16>,
    return
  }
  func.func @transform_0(%arg0: i32, %arg1: i32) -> (i32, i32, i32, i32, i32) {
    %c0_i32 = arith.constant 0 : i32
    %c0_i32_0 = arith.constant 0 : i32
    %c0_i32_1 = arith.constant 0 : i32
    %c0_i32_2 = arith.constant 0 : i32
    return %arg0, %arg1, %c0_i32, %c0_i32_0, %c0_i32_1 : i32, i32, i32, i32, i32
  }
  func.func @transform_1(%arg0: i32, %arg1: i32) -> (i32, i32, i32) {
    %c0_i32 = arith.constant 0 : i32
    %c0_i32_0 = arith.constant 0 : i32
    %c0_i32_1 = arith.constant 0 : i32
    %c0_i32_2 = arith.constant 0 : i32
    return %c0_i32, %c0_i32_0, %c0_i32_1 : i32, i32, i32
  }
  func.func @transform_2(%arg0: i32, %arg1: i32) -> (i32, i32) {
    %c0_i32 = arith.constant 0 : i32
    %c0_i32_0 = arith.constant 0 : i32
    %c0_i32_1 = arith.constant 0 : i32
    return %c0_i32, %c0_i32_0 : i32, i32
  }
  func.func @transform_3(%arg0: i32, %arg1: i32) -> (i32, i32, i32, i32, i32) {
    %c0_i32 = arith.constant 0 : i32
    %c0_i32_0 = arith.constant 0 : i32
    %c0_i32_1 = arith.constant 0 : i32
    %c0_i32_2 = arith.constant 0 : i32
    return %arg0, %arg1, %c0_i32, %c0_i32_0, %c0_i32_1 : i32, i32, i32, i32, i32
  }
}

</mosaic_0001>

<bundles_post_ra>
// kernel: tile.8
= control target key start
LH: loop header
LB: loop body
LE: loop exit
PB: predicated region body
PF: predicated region fallthrough
CT: control target
= control target key end

     0   :  { %s22_s0 = inlined_call_operand.vmem [shape: f32[64], index: 0, kind: input, shape index: {}]   ;;  %s23_s1 = inlined_call_operand.vmem [shape: f32[2,64], index: 1, kind: output, shape index: {}]  }
   0x1   :  { %v4_v0 = vld [vmem:[%s22_s0] ss:$0 sm:$0xff] }
   0x2   :  { %5 = vst [vmem:[%s23_s1] sm:$0x3] %v4_v0 }

// kernel: tile.9
= control target key start
LH: loop header
LB: loop body
LE: loop exit
PB: predicated region body
PF: predicated region fallthrough
CT: control target
= control target key end

     0   :  { %vm7_vm0 = vcmask 523264   ;;  %vm13_vm1 = vcmask 1048064   ;;  %s39_s0 = inlined_call_operand.vmem [shape: f32[2,64], index: 0, kind: input, shape index: {}]   ;;  %s40_s1 = inlined_call_operand.vmem [shape: f32[1,128], index: 1, kind: output, shape index: {}]  }
   0x1   :  { %v4_v0 = vld [vmem:[%s39_s0] sm:$0x3]  ;;  %s22_s0 = smov 64  }
   0x2   :  { %5 = vst [vmem:[#allocation1] sm:$0x3] %v4_v0 }
   0x9   :  { %v10_v1 = vld [vmem:[#allocation1 + $0x1] sm:$0x1]   ;;  %v6_v2 = vld [vmem:[#allocation1] sm:$0x1]  }
   0xa   :  { %11 = vrot.lane.b32.xlu0 %v10_v1, %s22_s0  ;;  %8 = vst.msk [vmem:[#allocation0] sm:$0x1] %vm7_vm0, %v6_v2  }
  0x7c   :  { %v12_v3 = vpop.permute.xlu0 %11  }
  0x7d   :  { %14 = vst.msk [vmem:[#allocation0] sm:$0x1] %vm13_vm1, %v12_v3  }
  0x84   :  { %v18_v4 = vld [vmem:[#allocation0] sm:$0x1] }
  0x85   :  { %20 = vst [vmem:[%s40_s1] sm:$0x1] %v18_v4 }

// kernel: up_conv_forward.1
= control target key start
LH: loop header
LB: loop body
LE: loop exit
PB: predicated region body
PF: predicated region fallthrough
CT: control target
= control target key end

     0   :  { %s1764_s12 = smov 0   ;;  %s1766_s13 = smov 0   ;;  %s1949_s0 = inlined_call_operand.vmem [shape: bf16[2,2,10,16,16], index: 0, kind: input, shape index: {}]   ;;  %s1950_s1 = inlined_call_operand.vmem [shape: bf16[4,16,128], index: 1, kind: input, shape index: {}]   ;;  %s1951_s2 = inlined_call_operand.vmem [shape: f32[1,128], index: 2, kind: input, shape index: {}]   ;;  %s1952_s3 = inlined_call_operand.vmem [shape: bf16[2,16,2,16,128], index: 3, kind: output, shape index: {}]  }
   0x1   :  { %s1768_s14 = smov 0   ;;  %s1770_s15 = smov 0  }
   0x2   :  { %s1772_s16 = smov 0  }
   0x3 LB: > { %s22_s17 = sadd.s32 1, %s1734_s14  ;;  %s25_s18 = sadd.s32 1, %s1738_s15  ;;  %s1742_s16 = sphi %s1772_s16, %s13_s16   ;;  %s1738_s15 = sphi %s1770_s15, %s1956_s15   ;;  %s1734_s14 = sphi %s1768_s14, %s1955_s14   ;;  %s1730_s13 = sphi %s1766_s13, %s1954_s13   ;;  %s1726_s12 = sphi %s1764_s12, %s1953_s12  }
   0x4   : > { %p23_p0 = scmp.ge.s32.totalorder %s22_s17, 2  ;;  %p1212_p1 = scmp.ge.s32.totalorder %s1742_s16, 1 }
   0x5   : > { %p157_p2 = scmp.lt.s32.totalorder %s1742_s16, 5 }
   0x6   : > { %s1958_s17 = smov (%p23_p0, %s22_s17), 0  ;;  %s1960_s18 = smov (!%p23_p0, %s25_s18), %s1738_s15 }
   0x7   : > { %p158_p3 = pnand %p1212_p1, %p157_p2  ;;  %p27_p4 = scmp.ge.s32.totalorder %s1960_s18, 2 }
   0x8   : > { %v1676_v0 = vld [vmem:[%s1950_s1 + $0x8] sm:$0xff] (!%p158_p3)   ;;  %p190_p5 = scmp.lt.s32.totalorder (!%p158_p3), %s1730_s13, 1  ;;  %v1677_v1 = vld [vmem:[%s1950_s1 + $0x18] sm:$0xff] (!%p158_p3)   ;;  %p192_p6 = scmp.lt.s32.totalorder (!%p158_p3), %s1726_s12, 1  ;;  %v1679_v2 = vld [vmem:[%s1950_s1] sm:$0xff] (!%p158_p3)   ;;  %vm313_vm0 = vcmask (!%p158_p3), 130048  }
   0x9   : > { %s1962_s18 = smov (%p27_p4, %s1960_s18), 0  ;;  %161 = sbr.rel (%p158_p3) target bundleno = 304 (0x130), region = 32 }
   0xa   : > { %1530 = vmatprep.subr.bf16.mxu0 (!%p158_p3), %v1676_v0  ;;  %1566 = vmatprep.subr.bf16.mxu1 (!%p158_p3), %v1677_v1  ;;  %v1681_v3 = vld [vmem:[%s1950_s1 + $0x10] sm:$0xff] (!%p158_p3)   ;;  %s1214_s8 = sshll.u32 (!%p158_p3), %s1726_s12, 3  ;;  %v1879_v28 = vld [vmem:[%s1951_s2] ss:$0 sm:$0xff] (!%p158_p3) }
   0xb   : > { %1531 = vmatpush3.bf16.msra.mxu0 (!%p158_p3), %v1676_v0  ;;  %1567 = vmatpush3.bf16.msra.mxu1 (!%p158_p3), %v1677_v1  ;;  %p202_p7 = scmp.lt.s32.totalorder (!%p158_p3), %s1214_s8, 15 }
   0xc   : > { %1548 = vmatprep.subr.bf16.mxu0 (!%p158_p3), %v1679_v2  ;;  %1584 = vmatprep.subr.bf16.mxu1 (!%p158_p3), %v1681_v3 }
  0x10   : > { %s1964_s13 = smov (!%p190_p5, %s1730_s13), 1  ;;  %s1966_s8 = smov (!%p202_p7, %s1214_s8), 15 }
  0x11   : > { %s193_s23 = scalar_select %p192_p6, %s1726_s12, 1 }
  0x12   : > { %s1635_s26 = smul.u32 40, %s1964_s13  ;;  %s1215_s9 = sshll.u32 %s1966_s8, 2 }
  0x13   : > { %s1634_s29 = smul.u32 20, %s193_s23  ;;  %s1216_s10 = sshll.u32 %s1964_s13, 6 }
  0x14   : > { %s206_s20 = sadd.s32 %s1216_s10, %s1215_s9 }
  0x15   : > { %s196_s30 = sadd.s32 %s1635_s26, %s1634_s29  ;;  %s1217_s12 = sshll.u32 %s206_s20, 2 }
  0x16   : > { %s1213_s4 = sshll.u32 %s196_s30, 2  ;;  %s1892_s22 = scalar_lea.vmem %s1952_s3, %s1217_s12 }
  0x17   : > { %s1816_s7 = scalar_lea.vmem %s1949_s0, %s1213_s4 }
  0x18   : > { %v1678_v4 = vld [vmem:[%s1816_s7 + $0x8] sm:$0xff]   ;;  %v1680_v5 = vld [vmem:[%s1816_s7 + $0x10] sm:$0xff]   ;;  %v1683_v7 = vld [vmem:[%s1816_s7 + $0x18] sm:$0xff]  }
  0x19   : > { %1532 = vmatprep.mubr.msk.bf16.mxu0 %vm313_vm0, %v1678_v4  ;;  %v1682_v6 = vld [vmem:[%s1816_s7 + $0x10] sm:$0xff]   ;;  %1568 = vmatprep.mubr.msk.bf16.mxu1 %vm313_vm0, %v1680_v5  ;;  %v1684_v8 = vld [vmem:[%s1816_s7 + $0x18] sm:$0xff]   ;;  %v1685_v9 = vld [vmem:[%s1816_s7 + $0x20] sm:$0xff]  }
  0x1a   : > { %1533 = vmatmul.mubr.msk.bf16.vlgmr.msra.gmra.mrb[0].mxu0 %vm313_vm0, %v1682_v6  ;;  %1569 = vmatmul.mubr.msk.bf16.vlgmr.msra.gmra.mrb[0].mxu1 %vm313_vm0, %v1683_v7  ;;  %v1686_v10 = vld [vmem:[%s1816_s7 + $0x20] sm:$0xff]   ;;  %v1687_v11 = vld [vmem:[%s1816_s7 + $0x28] sm:$0xff]   ;;  %v1689_v13 = vld [vmem:[%s1816_s7 + $0x30] sm:$0xff]  }
  0x1b   : > { %1549 = vmatpush3.bf16.msra.mxu0 %v1679_v2  ;;  %1585 = vmatpush3.bf16.msra.mxu1 %v1681_v3  ;;  %v1688_v12 = vld [vmem:[%s1816_s7 + $0x28] sm:$0xff]   ;;  %v1690_v14 = vld [vmem:[%s1816_s7 + $0x30] sm:$0xff]   ;;  %v1691_v15 = vld [vmem:[%s1816_s7 + $0x38] sm:$0xff]  }
  0x1c   : > { %1536 = vmatprep.mubr.msk.bf16.mxu0 %vm313_vm0, %v1684_v8  ;;  %1572 = vmatprep.mubr.msk.bf16.mxu1 %vm313_vm0, %v1685_v9  ;;  %v1692_v16 = vld [vmem:[%s1816_s7 + $0x38] sm:$0xff]   ;;  %v1693_v17 = vld [vmem:[%s1816_s7 + $0x40] sm:$0xff]   ;;  %v1695_v19 = vld [vmem:[%s1816_s7 + $0x48] sm:$0xff]  }
  0x1d   : > { %v1694_v18 = vld [vmem:[%s1816_s7 + $0x40] sm:$0xff]   ;;  %v1697_v21 = vld [vmem:[%s1816_s7 + $0x8] sm:$0xff]   ;;  %v1698_v22 = vld [vmem:[%s1816_s7 + $0x10] sm:$0xff]  }
  0x1e   : > { %v1696_v20 = vld [vmem:[%s1816_s7] sm:$0xff]   ;;  %v1699_v23 = vld [vmem:[%s1816_s7 + $0x18] sm:$0xff]   ;;  %v1701_v25 = vld [vmem:[%s1816_s7 + $0x28] sm:$0xff]  }
  0x1f   : > { %v1700_v24 = vld [vmem:[%s1816_s7 + $0x20] sm:$0xff]   ;;  %v1702_v26 = vld [vmem:[%s1816_s7 + $0x30] sm:$0xff]   ;;  %v1703_v27 = vld [vmem:[%s1816_s7 + $0x38] sm:$0xff]  }
  0x22   : > { %1537 = vmatmul.mubr.msk.bf16.gmra.mrb[4].mxu0 %vm313_vm0, %v1686_v10  ;;  %1573 = vmatmul.mubr.msk.bf16.gmra.mrb[4].mxu1 %vm313_vm0, %v1687_v11 }
  0x23   : > { %1540 = vmatprep.mubr.msk.bf16.mxu0 %vm313_vm0, %v1688_v12  ;;  %1576 = vmatprep.mubr.msk.bf16.mxu1 %vm313_vm0, %v1689_v13 }
  0x2a   : > { %1541 = vmatmul.mubr.msk.bf16.gmra.mrb[8].mxu0 %vm313_vm0, %v1690_v14  ;;  %1577 = vmatmul.mubr.msk.bf16.gmra.mrb[8].mxu1 %vm313_vm0, %v1691_v15 }
  0x2b   : > { %1544 = vmatprep.mubr.msk.bf16.mxu0 %vm313_vm0, %v1692_v16  ;;  %1580 = vmatprep.mubr.msk.bf16.mxu1 %vm313_vm0, %v1693_v17 }
  0x32   : > { %1545 = vmatmul.mubr.msk.bf16.gmra.mrb[12].mxu0 %vm313_vm0, %v1694_v18  ;;  %1581 = vmatmul.mubr.msk.bf16.gmra.mrb[12].mxu1 %vm313_vm0, %v1695_v19 }
  0x33   : > { %1550 = vmatprep.mubr.msk.bf16.mxu0 %vm313_vm0, %v1696_v20  ;;  %1586 = vmatprep.mubr.msk.bf16.mxu1 %vm313_vm0, %v1678_v4 }
  0x3a   : > { %1551 = vmatmul.mubr.msk.bf16.vlgmr.msra.gmra.mrb[0].mxu0 %vm313_vm0, %v1697_v21  ;;  %1587 = vmatmul.mubr.msk.bf16.vlgmr.msra.gmra.mrb[0].mxu1 %vm313_vm0, %v1682_v6 }
  0x3b   : > { %1554 = vmatprep.mubr.msk.bf16.mxu0 %vm313_vm0, %v1698_v22  ;;  %1590 = vmatprep.mubr.msk.bf16.mxu1 %vm313_vm0, %v1684_v8 }
  0x42   : > { %1555 = vmatmul.mubr.msk.bf16.gmra.mrb[4].mxu0 %vm313_vm0, %v1699_v23  ;;  %1591 = vmatmul.mubr.msk.bf16.gmra.mrb[4].mxu1 %vm313_vm0, %v1686_v10 }
  0x43   : > { %1558 = vmatprep.mubr.msk.bf16.mxu0 %vm313_vm0, %v1700_v24  ;;  %1594 = vmatprep.mubr.msk.bf16.mxu1 %vm313_vm0, %v1688_v12 }
  0x4a   : > { %1559 = vmatmul.mubr.msk.bf16.gmra.mrb[8].mxu0 %vm313_vm0, %v1701_v25  ;;  %1595 = vmatmul.mubr.msk.bf16.gmra.mrb[8].mxu1 %vm313_vm0, %v1690_v14 }
  0x4b   : > { %1562 = vmatprep.mubr.msk.bf16.mxu0 %vm313_vm0, %v1702_v26  ;;  %1598 = vmatprep.mubr.msk.bf16.mxu1 %vm313_vm0, %v1692_v16 }
  0x52   : > { %1563 = vmatmul.mubr.msk.bf16.gmra.mrb[12].mxu0 %vm313_vm0, %v1703_v27  ;;  %1599 = vmatmul.mubr.msk.bf16.gmra.mrb[12].mxu1 %vm313_vm0, %v1694_v18 }
 0x10d   : > { %v1552_v29 = vpop.f32.mrb[0].mxu0  ;;  %v1588_v31 = vpop.f32.mrb[0].mxu1 }
 0x10e   : > { %v610_v30 = vadd.f32 %v1552_v29, %v1879_v28  ;;  %v539_v32 = vpop.f32.mrb[1].mxu0  ;;  %v998_v33 = vadd.f32 %v1588_v31, %v1879_v28  ;;  %v933_v35 = vpop.f32.mrb[1].mxu1 }
 0x10f   : > { %v608_v34 = vadd.f32 %v1879_v28, %v539_v32  ;;  %v1553_v36 = vpop.f32.mrb[2].mxu0  ;;  %v996_v37 = vadd.f32 %v1879_v28, %v933_v35  ;;  %v1589_v39 = vpop.f32.mrb[2].mxu1 }
 0x110   : > { %v611_v38 = vadd.f32 %v1553_v36, %v1879_v28  ;;  %v542_v40 = vpop.f32.mrb[3].mxu0  ;;  %v999_v41 = vadd.f32 %v1589_v39, %v1879_v28  ;;  %v936_v43 = vpop.f32.mrb[3].mxu1  ;;  %v626_v44 = vmax.f32 %v610_v30, 0.0  ;;  %v1014_v47 = vmax.f32 %v998_v33, 0.0 }
 0x111   : > { %v609_v42 = vadd.f32 %v1879_v28, %v542_v40  ;;  %v997_v46 = vadd.f32 %v1879_v28, %v936_v43  ;;  %v624_v48 = vmax.f32 %v608_v34, 0.0  ;;  %v1012_v51 = vmax.f32 %v996_v37, 0.0 }
 0x112   : > { %v627_v45 = vmax.f32 %v611_v38, 0.0  ;;  %v1015_v49 = vmax.f32 %v999_v41, 0.0 }
 0x113   : > { %v625_v50 = vmax.f32 %v609_v42, 0.0  ;;  %v1013_v53 = vmax.f32 %v997_v46, 0.0 }
 0x114   : > { %v1407_v52 = vpack.c.bf16 %v627_v45, %v626_v44  ;;  %v1447_v54 = vpack.c.bf16 %v1015_v49, %v1014_v47 }
 0x115   : > { %v1402_v55 = vpack.c.bf16 %v625_v50, %v624_v48  ;;  %v1556_v56 = vpop.f32.mrb[4].mxu0  ;;  %v1442_v57 = vpack.c.bf16 %v1013_v53, %v1012_v51  ;;  %v1592_v59 = vpop.f32.mrb[4].mxu1 }
 0x116   : > { %1479 = vst [vmem:[%s1892_s22 + $0x10] sm:$0xff] %v1407_v52   ;;  %v614_v58 = vadd.f32 %v1556_v56, %v1879_v28  ;;  %v555_v60 = vpop.f32.mrb[5].mxu0  ;;  %1487 = vst [vmem:[%s1892_s22 + $0x18] sm:$0xff] %v1447_v54   ;;  %v1002_v61 = vadd.f32 %v1592_v59, %v1879_v28  ;;  %v949_v63 = vpop.f32.mrb[5].mxu1 }
 0x117   : > { %1403 = vst [vmem:[%s1892_s22] sm:$0xff] %v1402_v55   ;;  %v612_v62 = vadd.f32 %v1879_v28, %v555_v60  ;;  %v1557_v0 = vpop.f32.mrb[6].mxu0  ;;  %1486 = vst [vmem:[%s1892_s22 + $0x8] sm:$0xff] %v1442_v57   ;;  %v1000_v1 = vadd.f32 %v1879_v28, %v949_v63  ;;  %v1593_v3 = vpop.f32.mrb[6].mxu1 }
 0x118   : > { %v615_v2 = vadd.f32 %v1557_v0, %v1879_v28  ;;  %v558_v4 = vpop.f32.mrb[7].mxu0  ;;  %v1003_v5 = vadd.f32 %v1593_v3, %v1879_v28  ;;  %v952_v7 = vpop.f32.mrb[7].mxu1  ;;  %v630_v8 = vmax.f32 %v614_v58, 0.0  ;;  %v1018_v11 = vmax.f32 %v1002_v61, 0.0 }
 0x119   : > { %v613_v6 = vadd.f32 %v1879_v28, %v558_v4  ;;  %v1001_v10 = vadd.f32 %v1879_v28, %v952_v7  ;;  %v628_v12 = vmax.f32 %v612_v62, 0.0  ;;  %v1016_v15 = vmax.f32 %v1000_v1, 0.0 }
 0x11a   : > { %v631_v9 = vmax.f32 %v615_v2, 0.0  ;;  %v1019_v13 = vmax.f32 %v1003_v5, 0.0 }
 0x11b   : > { %v629_v14 = vmax.f32 %v613_v6, 0.0  ;;  %v1017_v17 = vmax.f32 %v1001_v10, 0.0 }
 0x11c   : > { %v1417_v16 = vpack.c.bf16 %v631_v9, %v630_v8  ;;  %v1457_v18 = vpack.c.bf16 %v1019_v13, %v1018_v11 }
 0x11d   : > { %v1412_v19 = vpack.c.bf16 %v629_v14, %v628_v12  ;;  %v1560_v20 = vpop.f32.mrb[8].mxu0  ;;  %v1452_v21 = vpack.c.bf16 %v1017_v17, %v1016_v15  ;;  %v1596_v23 = vpop.f32.mrb[8].mxu1 }
 0x11e   : > { %1481 = vst [vmem:[%s1892_s22 + $0x30] sm:$0xff] %v1417_v16   ;;  %v618_v22 = vadd.f32 %v1560_v20, %v1879_v28  ;;  %v571_v24 = vpop.f32.mrb[9].mxu0  ;;  %1489 = vst [vmem:[%s1892_s22 + $0x38] sm:$0xff] %v1457_v18   ;;  %v1006_v25 = vadd.f32 %v1596_v23, %v1879_v28  ;;  %v965_v27 = vpop.f32.mrb[9].mxu1 }
 0x11f   : > { %1480 = vst [vmem:[%s1892_s22 + $0x20] sm:$0xff] %v1412_v19   ;;  %v616_v26 = vadd.f32 %v1879_v28, %v571_v24  ;;  %v1561_v29 = vpop.f32.mrb[10].mxu0  ;;  %1488 = vst [vmem:[%s1892_s22 + $0x28] sm:$0xff] %v1452_v21   ;;  %v1004_v30 = vadd.f32 %v1879_v28, %v965_v27  ;;  %v1597_v32 = vpop.f32.mrb[10].mxu1 }
 0x120   : > { %v619_v31 = vadd.f32 %v1561_v29, %v1879_v28  ;;  %v574_v33 = vpop.f32.mrb[11].mxu0  ;;  %v1007_v34 = vadd.f32 %v1597_v32, %v1879_v28  ;;  %v968_v36 = vpop.f32.mrb[11].mxu1  ;;  %v634_v37 = vmax.f32 %v618_v22, 0.0  ;;  %v1022_v40 = vmax.f32 %v1006_v25, 0.0 }
 0x121   : > { %v617_v35 = vadd.f32 %v1879_v28, %v574_v33  ;;  %v1005_v39 = vadd.f32 %v1879_v28, %v968_v36  ;;  %v632_v41 = vmax.f32 %v616_v26, 0.0  ;;  %v1020_v44 = vmax.f32 %v1004_v30, 0.0 }
 0x122   : > { %v635_v38 = vmax.f32 %v619_v31, 0.0  ;;  %v1023_v42 = vmax.f32 %v1007_v34, 0.0 }
 0x123   : > { %v633_v43 = vmax.f32 %v617_v35, 0.0  ;;  %v1021_v46 = vmax.f32 %v1005_v39, 0.0 }
 0x124   : > { %v1427_v45 = vpack.c.bf16 %v635_v38, %v634_v37  ;;  %v1467_v47 = vpack.c.bf16 %v1023_v42, %v1022_v40 }
 0x125   : > { %v1422_v48 = vpack.c.bf16 %v633_v43, %v632_v41  ;;  %v1564_v49 = vpop.f32.mrb[12].mxu0  ;;  %v1462_v50 = vpack.c.bf16 %v1021_v46, %v1020_v44  ;;  %v1600_v52 = vpop.f32.mrb[12].mxu1 }
 0x126   : > { %1483 = vst [vmem:[%s1892_s22 + $0x50] sm:$0xff] %v1427_v45   ;;  %v622_v51 = vadd.f32 %v1564_v49, %v1879_v28  ;;  %v587_v53 = vpop.f32.mrb[13].mxu0  ;;  %1491 = vst [vmem:[%s1892_s22 + $0x58] sm:$0xff] %v1467_v47   ;;  %v1010_v54 = vadd.f32 %v1600_v52, %v1879_v28  ;;  %v981_v56 = vpop.f32.mrb[13].mxu1 }
 0x127   : > { %1482 = vst [vmem:[%s1892_s22 + $0x40] sm:$0xff] %v1422_v48   ;;  %v620_v55 = vadd.f32 %v1879_v28, %v587_v53  ;;  %v1565_v57 = vpop.f32.mrb[14].mxu0  ;;  %1490 = vst [vmem:[%s1892_s22 + $0x48] sm:$0xff] %v1462_v50   ;;  %v1008_v58 = vadd.f32 %v1879_v28, %v981_v56  ;;  %v1601_v60 = vpop.f32.mrb[14].mxu1 }
 0x128   : > { %v623_v59 = vadd.f32 %v1565_v57, %v1879_v28  ;;  %v590_v61 = vpop.f32.mrb[15].mxu0  ;;  %v1011_v62 = vadd.f32 %v1601_v60, %v1879_v28  ;;  %v984_v0 = vpop.f32.mrb[15].mxu1  ;;  %v638_v1 = vmax.f32 %v622_v51, 0.0  ;;  %v1026_v4 = vmax.f32 %v1010_v54, 0.0 }
 0x129   : > { %v621_v63 = vadd.f32 %v1879_v28, %v590_v61  ;;  %v1009_v3 = vadd.f32 %v1879_v28, %v984_v0  ;;  %v636_v5 = vmax.f32 %v620_v55, 0.0  ;;  %v1024_v8 = vmax.f32 %v1008_v58, 0.0 }
 0x12a   : > { %v639_v2 = vmax.f32 %v623_v59, 0.0  ;;  %v1027_v6 = vmax.f32 %v1011_v62, 0.0 }
 0x12b   : > { %v637_v7 = vmax.f32 %v621_v63, 0.0  ;;  %v1025_v10 = vmax.f32 %v1009_v3, 0.0 }
 0x12c   : > { %v1437_v9 = vpack.c.bf16 %v639_v2, %v638_v1  ;;  %v1477_v11 = vpack.c.bf16 %v1027_v6, %v1026_v4 }
 0x12d   : > { %v1432_v12 = vpack.c.bf16 %v637_v7, %v636_v5  ;;  %v1472_v13 = vpack.c.bf16 %v1025_v10, %v1024_v8 }
 0x12e   : > { %1485 = vst [vmem:[%s1892_s22 + $0x70] sm:$0xff] %v1437_v9   ;;  %1493 = vst [vmem:[%s1892_s22 + $0x78] sm:$0xff] %v1477_v11  }
 0x12f   : > { %1484 = vst [vmem:[%s1892_s22 + $0x60] sm:$0xff] %v1432_v12   ;;  %1492 = vst [vmem:[%s1892_s22 + $0x68] sm:$0xff] %v1472_v13  }
 0x130 PF: > { %s13_s16 = sadd.s32 1, %s1742_s16   ;;  %s1953_s12 = smov %s1734_s14 }
 0x131   : > { %p10_p8 = scmp.ge.s32.totalorder %s13_s16, 6   ;;  %s1954_s13 = smov %s1738_s15 }
 0x132   : > { %s1955_s14 = smov %s1958_s17  ;;  %s1956_s15 = smov %s1962_s18 }
 0x133   :  { %12 = sbr.rel (!%p10_p8) target bundleno = 3 (0x3), region = 68 }

</bundles_post_ra>
